<compile_context>
chip_gen: v5e
topology: v5e:2x2
jax: 0.10.0
libtpu: 0.0.40
codegen_flags: <defaults>
</compile_context>

<pallas_src>
import functools
import math

import jax
import jax.numpy as jnp
from jax.experimental import pallas as pl
from jax.experimental.pallas import tpu as pltpu


def _round_up(v, m):
    return ((v + m - 1) // m) * m


# ---------------------------------------------------------------------------
# Kernel: one batch tile, all branches fused.
# ---------------------------------------------------------------------------
def _fused_projection_kernel(*refs, n_branches):
    """out = relu(sum_i x_i @ wt_i + bias) for one batch tile.

    refs layout: (x_0..x_{B-1}, wt_0..wt_{B-1}, bias, out)
      x_i  : [tm, D_i]       f32 activation tile (batch-grid tiled)
      wt_i : [D_i, P_total]  bf16, zero outside this branch's output columns
                             (block-diagonal slice -> per-branch matmuls SUM
                             directly into the concatenated layout; no
                             in-kernel concatenate / cross-lane shuffles)
      bias : [1, P_total]    f32 (resident)
      out  : [tm, P_total]   f32
    """
    o_ref = refs[-1]
    bias_ref = refs[-2]

    acc = None
    for i in range(n_branches):
        x = refs[i][...].astype(jnp.bfloat16)            # native MXU dtype
        wt = refs[n_branches + i][...]                   # bf16 resident weight
        y = jnp.dot(x, wt, preferred_element_type=jnp.float32)  # f32 accum
        acc = y if acc is None else acc + y

    acc = acc + bias_ref[...]                            # f32 epilogue (VPU)
    o_ref[...] = jnp.maximum(acc, 0.0).astype(o_ref.dtype)


def _choose_tile_rows(n_rows, d_total, p_total, resident_bytes,
                      act_bytes=4, budget_bytes=12 * 1024 * 1024):
    """Batch-tile rows that fit under every generation's default scoped-VMEM
    limit while staying large enough to pipeline well (<= 512 rows)."""
    per_row = 2 * (d_total + p_total) * act_bytes        # double-buffered acts
    avail = max(budget_bytes - 2 * resident_bytes, 8 * per_row)
    tm = avail // per_row
    tm = max(8, min(512, (tm // 8) * 8))
    tm = min(tm, _round_up(n_rows, 8))
    return int(tm)


# ---------------------------------------------------------------------------
# Forward wrapper: single pallas_call, batch grid, resident weights.
# ---------------------------------------------------------------------------
def embeddings_projection_forward(xs, wts, bias, tile_rows=None):
    """xs:  list of [N, D_i] f32 activations
       wts: list of [D_i, P_total] bf16 block-diagonal weight slices
       bias:[1, P_total] f32
       returns [N, P_total] f32
    """
    n_branches = len(wts)
    assert len(xs) == n_branches
    n_rows = xs[0].shape[0]
    d_dims = [int(x.shape[1]) for x in xs]
    p_total = int(bias.shape[1])

    resident_bytes = (sum(int(w.size) * w.dtype.itemsize for w in wts)
                      + int(bias.size) * 4)
    if tile_rows is None:
        tm = _choose_tile_rows(n_rows, sum(d_dims), p_total, resident_bytes)
    else:
        tm = min(max(8, _round_up(int(tile_rows), 8)), _round_up(n_rows, 8))

    grid = (pl.cdiv(n_rows, tm),)

    in_specs = (
        # Batch-tiled activations.
        [pl.BlockSpec((tm, d), lambda i: (i, 0)) for d in d_dims]
        # Resident weights: constant index_map -> fetched once, reused.
        + [pl.BlockSpec((d, p_total), lambda i: (0, 0)) for d in d_dims]
        # Resident bias.
        + [pl.BlockSpec((1, p_total), lambda i: (0, 0))]
    )
    out_spec = pl.BlockSpec((tm, p_total), lambda i: (i, 0))

    kernel = functools.partial(_fused_projection_kernel, n_branches=n_branches)

    return pl.pallas_call(
        kernel,
        out_shape=jax.ShapeDtypeStruct((n_rows, p_total), xs[0].dtype),
        grid_spec=pltpu.PrefetchScalarGridSpec(
            num_scalar_prefetch=0,
            grid=grid,
            in_specs=in_specs,
            out_specs=out_spec,
        ),
        compiler_params=pltpu.CompilerParams(
            dimension_semantics=("parallel",),   # shard batch tiles across TCs
        ),
    )(*xs, *wts, bias)


# ---------------------------------------------------------------------------
# Module-equivalent wrapper
# ---------------------------------------------------------------------------
class EmbeddingsProjection:
    """JAX/Pallas equivalent of the PyTorch EmbeddingsProjection module."""

    def __init__(self, projections_desc, dropout, key):
        self.dropout = dropout          # identity at inference
        self.init_stddev = 0.01
        p_dims = [p for _, p in projections_desc]
        self.p_total = int(sum(p_dims))

        self.wts = []                   # list of [D_i, P_total] bf16
        biases = []
        p_off = 0
        for (original_dim, projected_dim) in projections_desc:
            key, wkey, bkey = jax.random.split(key, 3)
            # weights_init: normal(0, 0.01) on the PyTorch-layout [P, D] weight;
            # stored transposed and zero-padded to the full concat width so the
            # kernel's per-branch matmuls sum into the concatenated output.
            w = self.init_stddev * jax.random.normal(
                wkey, (projected_dim, original_dim), dtype=jnp.float32)
            wt_full = jnp.zeros((original_dim, self.p_total), jnp.float32)
            wt_full = wt_full.at[:, p_off:p_off + projected_dim].set(
                jnp.transpose(w))
            self.wts.append(wt_full.astype(jnp.bfloat16))
            # PyTorch default Linear bias init: U(-1/sqrt(in), 1/sqrt(in)).
            bound = 1.0 / math.sqrt(original_dim)
            biases.append(jax.random.uniform(
                bkey, (projected_dim,), dtype=jnp.float32,
                minval=-bound, maxval=bound))
            p_off += projected_dim
        self.bias = jnp.concatenate(biases).reshape(1, self.p_total)  # f32

    def __call__(self, x, tile_rows=None):
        # TODO(synk): training-mode dropout not implemented (eval semantics).
        return embeddings_projection_forward(list(x), self.wts, self.bias,
                                             tile_rows=tile_rows)


# ---------------------------------------------------------------------------
# Pure-JAX reference (same bf16 weights, f32 math) for the numerical check
# ---------------------------------------------------------------------------
def _reference_forward(xs, wts, bias):
    y = sum(x.astype(jnp.float32) @ wt.astype(jnp.float32)
            for x, wt in zip(xs, wts)) + bias
    return jnp.maximum(y, 0.0)


if __name__ == "__main__":
    key = jax.random.PRNGKey(0)

    # Two embedding branches: (original_dim, projected_dim)
    projections_desc = [(128, 64), (256, 32)]
    p_total = sum(p for _, p in projections_desc)

    key, k0, k1, kparam = jax.random.split(key, 4)
    model = EmbeddingsProjection(projections_desc, dropout=0.1, key=kparam)

    # --- small single-tile check ---
    batch = 8
    x0 = jax.random.normal(k0, (batch, projections_desc[0][0]), dtype=jnp.float32)
    x1 = jax.random.normal(k1, (batch, projections_desc[1][0]), dtype=jnp.float32)
    x = [x0, x1]

    out = jax.block_until_ready(model(x))
    ref = _reference_forward(x, model.wts, model.bias)
    assert out.shape == (batch, p_total), out.shape
    assert jnp.allclose(out, ref, atol=2e-2, rtol=2e-2), "mismatch vs reference"

    # --- multi-tile check (exercises the batch grid, incl. a partial block) ---
    key, k2, k3 = jax.random.split(key, 3)
    batch2 = 20
    x2 = [jax.random.normal(k2, (batch2, projections_desc[0][0]), jnp.float32),
          jax.random.normal(k3, (batch2, projections_desc[1][0]), jnp.float32)]
    out2 = jax.block_until_ready(model(x2, tile_rows=8))   # grid = cdiv(20, 8) = 3
    ref2 = _reference_forward(x2, model.wts, model.bias)
    assert out2.shape == (batch2, p_total), out2.shape
    assert jnp.allclose(out2, ref2, atol=2e-2, rtol=2e-2), "grid-path mismatch"

    print("KERNEL_OK")
</pallas_src>

<mosaic_0001>
module attributes {stable_mosaic.version = 11 : i64} {
  func.func @_fused_projection_kernel(%arg0: i32, %arg1: memref<8x128xf32, #tpu.memory_space<vmem>>, %arg2: memref<8x256xf32, #tpu.memory_space<vmem>>, %arg3: memref<128x96xbf16, #tpu.memory_space<vmem>>, %arg4: memref<256x96xbf16, #tpu.memory_space<vmem>>, %arg5: memref<1x96xf32, #tpu.memory_space<vmem>>, %arg6: memref<8x96xf32, #tpu.memory_space<vmem>>) attributes {dimension_semantics = [#tpu.dimension_semantics<parallel>], iteration_bounds = array<i64: 1>, scalar_prefetch = 0 : i64, scratch_operands = 0 : i64, tpu.core_type = #tpu.core_type<tc>, window_params = [{transform_indices = @transform_0, window_bounds = array<i64: 8, 128>}, {transform_indices = @transform_1, window_bounds = array<i64: 8, 256>}, {pipeline_mode = #tpu.pipeline_mode<synchronous>, transform_indices = @transform_2, window_bounds = array<i64: 128, 96>}, {pipeline_mode = #tpu.pipeline_mode<synchronous>, transform_indices = @transform_3, window_bounds = array<i64: 256, 96>}, {pipeline_mode = #tpu.pipeline_mode<synchronous>, transform_indices = @transform_4, window_bounds = array<i64: 1, 96>}, {transform_indices = @transform_5, window_bounds = array<i64: 8, 96>}]} {
    %c0 = arith.constant 0 : index
    %c0_0 = arith.constant 0 : index
    %0 = vector.load %arg1[%c0, %c0_0] : memref<8x128xf32, #tpu.memory_space<vmem>>, vector<8x128xf32>
    %1 = arith.truncf %0 : vector<8x128xf32> to vector<8x128xbf16>
    %c0_1 = arith.constant 0 : index
    %c0_2 = arith.constant 0 : index
    %2 = vector.load %arg3[%c0_1, %c0_2] : memref<128x96xbf16, #tpu.memory_space<vmem>>, vector<128x96xbf16>
    %cst = arith.constant dense<0.000000e+00> : vector<8x96xf32>
    %3 = tpu.matmul %1, %2, %cst {dimension_numbers = #tpu.dot_dimension_numbers<[1], [0], [0], [1], [0, 0, 1, 1], [], []>} : vector<8x128xbf16>, vector<128x96xbf16>, vector<8x96xf32> -> vector<8x96xf32>
    %c0_3 = arith.constant 0 : index
    %c0_4 = arith.constant 0 : index
    %4 = vector.load %arg2[%c0_3, %c0_4] : memref<8x256xf32, #tpu.memory_space<vmem>>, vector<8x256xf32>
    %5 = arith.truncf %4 : vector<8x256xf32> to vector<8x256xbf16>
    %c0_5 = arith.constant 0 : index
    %c0_6 = arith.constant 0 : index
    %6 = vector.load %arg4[%c0_5, %c0_6] : memref<256x96xbf16, #tpu.memory_space<vmem>>, vector<256x96xbf16>
    %cst_7 = arith.constant dense<0.000000e+00> : vector<8x96xf32>
    %7 = tpu.matmul %5, %6, %cst_7 {dimension_numbers = #tpu.dot_dimension_numbers<[1], [0], [0], [1], [0, 0, 1, 1], [], []>} : vector<8x256xbf16>, vector<256x96xbf16>, vector<8x96xf32> -> vector<8x96xf32>
    %8 = arith.addf %3, %7 : vector<8x96xf32>
    %c0_8 = arith.constant 0 : index
    %c0_9 = arith.constant 0 : index
    %9 = vector.load %arg5[%c0_8, %c0_9] : memref<1x96xf32, #tpu.memory_space<vmem>>, vector<1x96xf32>
    %10 = vector.broadcast %9 : vector<1x96xf32> to vector<8x96xf32>
    %11 = arith.addf %8, %10 : vector<8x96xf32>
    %cst_10 = arith.constant 0.000000e+00 : f32
    %12 = vector.broadcast %cst_10 : f32 to vector<8x96xf32>
    %13 = arith.maximumf %11, %12 : vector<8x96xf32>
    %c0_11 = arith.constant 0 : index
    %c0_12 = arith.constant 0 : index
    %14 = vector.load %arg6[%c0_11, %c0_12] : memref<8x96xf32, #tpu.memory_space<vmem>>, vector<8x96xf32>
    tpu.vector_store %arg6[%c0_11, %c0_12], %13 {strides = array<i32>} : memref<8x96xf32, #tpu.memory_space<vmem>>, vector<8x96xf32>,
    return
  }
  func.func @transform_0(%arg0: i32) -> (i32, i32) {
    %c0_i32 = arith.constant 0 : i32
    %c0_i32_0 = arith.constant 0 : i32
    return %arg0, %c0_i32 : i32, i32
  }
  func.func @transform_1(%arg0: i32) -> (i32, i32) {
    %c0_i32 = arith.constant 0 : i32
    %c0_i32_0 = arith.constant 0 : i32
    return %arg0, %c0_i32 : i32, i32
  }
  func.func @transform_2(%arg0: i32) -> (i32, i32) {
    %c0_i32 = arith.constant 0 : i32
    %c0_i32_0 = arith.constant 0 : i32
    %c0_i32_1 = arith.constant 0 : i32
    return %c0_i32, %c0_i32_0 : i32, i32
  }
  func.func @transform_3(%arg0: i32) -> (i32, i32) {
    %c0_i32 = arith.constant 0 : i32
    %c0_i32_0 = arith.constant 0 : i32
    %c0_i32_1 = arith.constant 0 : i32
    return %c0_i32, %c0_i32_0 : i32, i32
  }
  func.func @transform_4(%arg0: i32) -> (i32, i32) {
    %c0_i32 = arith.constant 0 : i32
    %c0_i32_0 = arith.constant 0 : i32
    %c0_i32_1 = arith.constant 0 : i32
    return %c0_i32, %c0_i32_0 : i32, i32
  }
  func.func @transform_5(%arg0: i32) -> (i32, i32) {
    %c0_i32 = arith.constant 0 : i32
    %c0_i32_0 = arith.constant 0 : i32
    return %arg0, %c0_i32 : i32, i32
  }
}

</mosaic_0001>

<bundles_post_ra>
// kernel: tpu_custom_call.1
= control target key start
LH: loop header
LB: loop body
LE: loop exit
PB: predicated region body
PF: predicated region fallthrough
CT: control target
= control target key end

     0   :  { %s548_s0 = inlined_call_operand.vmem [shape: f32[8,128], index: 0, kind: input, shape index: {}]   ;;  %s549_s1 = inlined_call_operand.vmem [shape: f32[8,256], index: 1, kind: input, shape index: {}]   ;;  %s550_s2 = inlined_call_operand.vmem [shape: bf16[128,96], index: 2, kind: input, shape index: {}]   ;;  %s551_s3 = inlined_call_operand.vmem [shape: bf16[256,96], index: 3, kind: input, shape index: {}]   ;;  %s552_s4 = inlined_call_operand.vmem [shape: f32[1,96], index: 4, kind: input, shape index: {}]   ;;  %s553_s5 = inlined_call_operand.hbm [shape: f32[8,96], index: 5, kind: output, shape index: {}]  }
   0x1   :  { %v393_v0 = vld [vmem:[%s551_s3 + $0x38] sm:$0xff]  ;;  %v392_v3 = vld [vmem:[%s551_s3 + $0x30] sm:$0xff]  ;;  %v391_v6 = vld [vmem:[%s551_s3 + $0x28] sm:$0xff] }
   0x2   :  { %v401_v1 = vld [vmem:[%s551_s3 + $0x78] sm:$0xff]  ;;  %171 = vmatpush.bf16.msra.mxu0 %v393_v0  ;;  %v400_v4 = vld [vmem:[%s551_s3 + $0x70] sm:$0xff]  ;;  %v399_v7 = vld [vmem:[%s551_s3 + $0x68] sm:$0xff] }
   0x3   :  { %v385_v2 = vld [vmem:[%s550_s2 + $0x38] sm:$0xff]  ;;  %184 = vmatpush.bf16.msra.mxu1 %v401_v1  ;;  %v384_v5 = vld [vmem:[%s550_s2 + $0x30] sm:$0xff]  ;;  %v383_v8 = vld [vmem:[%s550_s2 + $0x28] sm:$0xff] }
   0x4   :  { %245 = vmatpush.bf16.msra.mxu2 %v385_v2 }
   0x6   :  { %172 = vmatpush.bf16.msra.mxu0 %v392_v3 }
   0x7   :  { %185 = vmatpush.bf16.msra.mxu1 %v400_v4 }
   0x8   :  { %246 = vmatpush.bf16.msra.mxu2 %v384_v5 }
   0x9   :  { %10 = vsyncpa [#allocation3], 0  ;;  %v390_v9 = vld [vmem:[%s551_s3 + $0x20] sm:$0xff]  ;;  %v389_v12 = vld [vmem:[%s551_s3 + $0x18] sm:$0xff]  ;;  %s273_s24 = sshll.u32 %s553_s5, 4  ;;  %vm264_vm0 = vcmask 785408   ;;  %s274_s24 = int_to_ptr.hbm [resolvable:$true] %s273_s24 }
   0xa   :  { %173 = vmatpush.bf16.msra.mxu0 %v391_v6  ;;  %v398_v10 = vld [vmem:[%s551_s3 + $0x60] sm:$0xff]  ;;  %v397_v13 = vld [vmem:[%s551_s3 + $0x58] sm:$0xff]  ;;  %v388_v15 = vld [vmem:[%s551_s3 + $0x10] sm:$0xff] }
   0xb   :  { %186 = vmatpush.bf16.msra.mxu1 %v399_v7  ;;  %v382_v11 = vld [vmem:[%s550_s2 + $0x20] sm:$0xff]  ;;  %v381_v14 = vld [vmem:[%s550_s2 + $0x18] sm:$0xff]  ;;  %v396_v16 = vld [vmem:[%s551_s3 + $0x50] sm:$0xff] }
   0xc   :  { %247 = vmatpush.bf16.msra.mxu2 %v383_v8  ;;  %v380_v17 = vld [vmem:[%s550_s2 + $0x10] sm:$0xff]  ;;  %v387_v18 = vld [vmem:[%s551_s3 + $0x8] sm:$0xff]  ;;  %v386_v21 = vld [vmem:[%s551_s3] sm:$0xff] }
   0xd   :  { %v395_v19 = vld [vmem:[%s551_s3 + $0x48] sm:$0xff]  ;;  %v394_v22 = vld [vmem:[%s551_s3 + $0x40] sm:$0xff] }
   0xe   :  { %174 = vmatpush.bf16.msra.mxu0 %v390_v9  ;;  %v379_v20 = vld [vmem:[%s550_s2 + $0x8] sm:$0xff]  ;;  %v39_v23 = vld [vmem:[%s549_s1] sm:$0xff] }
   0xf   :  { %187 = vmatpush.bf16.msra.mxu1 %v398_v10  ;;  %v40_v24 = vld [vmem:[%s549_s1 + $0x8] sm:$0xff]  ;;  %v378_v25 = vld [vmem:[%s550_s2] sm:$0xff]  ;;  %v41_v27 = vpack.c.bf16 %v39_v23, %v39_v23 }
  0x10   :  { %248 = vmatpush.bf16.msra.mxu2 %v382_v11  ;;  %v21_v26 = vld [vmem:[%s548_s0] sm:$0xff]  ;;  %v42_v28 = vpack.c.bf16 %v40_v24, %v40_v24  ;;  %s430_s0 = smov [#allocation2]  }
  0x11   :  { %v22_v29 = vpack.c.bf16 %v21_v26, %v21_v26  ;;  %v403_v33 = vld [vmem:[%s552_s4] ss:$0 sm:$0xff]  ;;  %s271_s2 = sshll.u32 %s430_s0, 4  ;;  %s272_s2 = int_to_ptr.vmem [resolvable:$true] %s271_s2 }
  0x12   :  { %175 = vmatpush.bf16.msra.mxu0 %v389_v12 }
  0x13   :  { %188 = vmatpush.bf16.msra.mxu1 %v397_v13 }
  0x14   :  { %249 = vmatpush.bf16.msra.mxu2 %v381_v14 }
  0x16   :  { %176 = vmatpush.bf16.msra.mxu0 %v388_v15 }
  0x17   :  { %189 = vmatpush.bf16.msra.mxu1 %v396_v16 }
  0x18   :  { %250 = vmatpush.bf16.msra.mxu2 %v380_v17 }
  0x1a   :  { %177 = vmatpush.bf16.msra.mxu0 %v387_v18 }
  0x1b   :  { %190 = vmatpush.bf16.msra.mxu1 %v395_v19 }
  0x1c   :  { %251 = vmatpush.bf16.msra.mxu2 %v379_v20 }
  0x1e   :  { %178 = vmatpush.bf16.msra.mxu0 %v386_v21 }
  0x1f   :  { %191 = vmatpush.bf16.msra.mxu1 %v394_v22 }
  0x20   :  { %252 = vmatpush.bf16.msra.mxu2 %v378_v25 }
  0x21   :  { %179 = vmatmul.bf16.vlgmr.msra.gmra.mxu0 %v41_v27 }
  0x22   :  { %192 = vmatmul.bf16.vlgmr.msra.gmra.mxu1 %v42_v28 }
  0x23   :  { %253 = vmatmul.bf16.vlgmr.msra.gmra.mxu2 %v22_v29 }
  0x9e   :  { %v180_v30 = vpop.f32.mrf.mxu0 }
  0x9f   :  { %v193_v31 = vpop.f32.mrf.mxu1 }
  0xa0   :  { %v194_v32 = vadd.f32 %v193_v31, %v180_v30 }
  0xa6   :  { %v254_v34 = vpop.f32.mrf.mxu2  ;;  %v182_v36 = vpop.f32.mrf.mxu0 }
  0xa7   :  { %v255_v35 = vadd.f32 %v254_v34, %v194_v32  ;;  %v195_v37 = vpop.f32.mrf.mxu1 }
  0xa9   :  { %v262_v38 = vadd.f32 %v403_v33, %v255_v35 }
  0xab   :  { %v263_v39 = vmax.f32 %v262_v38, 0.0 }
  0xad   :  { %265 = vst.msk [vmem:[#allocation2] sm:$0xff] %vm264_vm0, %v263_v39 }
  0xae   :  { %v256_v40 = vpop.f32.mrf.mxu2  ;;  %276 = dma.vmem_to_hbm [thread:$0]  %s272_s2, 128, %s274_s24, [#allocation3]  }
  0xaf   :  { %428 = dma.done.wait [#allocation3], 128  }
  0xb0   :  { %429 = vsyncadd [#allocation3], 4294967168 }
  0xb1   :  { %281 = vsyncpa [#allocation3], 1 }

</bundles_post_ra>
